<compile_context>
chip_gen: v7x
topology: tpu7x:2x2x1
jax: 0.10.0
libtpu: 0.0.40
codegen_flags: <defaults>
</compile_context>

<pallas_src>
import math

import jax
import jax.numpy as jnp
from jax.experimental import pallas as pl
from jax.experimental.pallas import tpu as pltpu


_TARGET_BLOCK_BYTES = 2 * 1024 * 1024  # ~2 MiB/block -> ~8 MiB resident
                                       # (2 bufs x (in + out)); headroom on all
                                       # of v5e / v6e / v7x.


def _copy_kernel(x_ref, o_ref):
    # Pure data movement: the "view" is a metadata change, the kernel body is
    # an identity copy of the current tile.
    o_ref[...] = x_ref[...]


def _sublane_multiple(itemsize: int) -> int:
    # Safe sublane granularity per dtype packing: 8 (f32), 16 (bf16), 32 (i8).
    return max(8, 32 // max(1, itemsize))


def _resolve_tail(in_shape, args):
    """Resolve the target non-batch shape (supports one -1 like torch.view)."""
    flat = int(math.prod(in_shape[1:]))
    tail = [int(d) for d in args]
    if -1 in tail:
        known = int(math.prod(d for d in tail if d != -1))
        tail[tail.index(-1)] = flat // known
    assert int(math.prod(tail)) == flat, "view(): incompatible shape"
    return tuple(tail), flat


def nn_reshape_pallas(x: jax.Array, args, *, copy: bool = True) -> jax.Array:
    """Reproduces torch: x.view((x.size(0),) + args).

    copy=False returns the metadata-only reshape (the zero-cost path).
    copy=True (default here, so the Pallas kernel is exercised) moves the data
    through a tiled identity-copy kernel.
    """
    b = x.shape[0]
    out_tail, flat = _resolve_tail(x.shape, args)
    out_shape = (b,) + out_tail

    if not copy:
        return x.reshape(out_shape)  # metadata-only: the real zero-cost path

    total = b * flat
    itemsize = jnp.dtype(x.dtype).itemsize
    sub_mult = _sublane_multiple(itemsize)

    # ---- Flatten the WHOLE tensor to a lane-dense (rows, lane) slab. --------
    lane = 0
    for cand in (1024, 512, 256, 128):
        if total % cand == 0:
            lane = cand
            break
    if lane:
        rows = total // lane
    else:
        # No 128-multiple factor of `total`: keep batch on the sublane axis and
        # the full (unaligned) feature extent on the lane axis; a full-extent
        # lane dim is always a legal block dim.
        rows, lane = b, flat

    # ---- Row tile: full extent if it fits the budget, else the largest ------
    # sublane-aligned tile <= ~2 MiB (preferring an exact divisor of rows).
    budget_rows = max(
        sub_mult,
        (_TARGET_BLOCK_BYTES // (lane * itemsize)) // sub_mult * sub_mult,
    )
    if rows <= budget_rows:
        tile_rows = rows  # single full-extent block (legal for any size)
    else:
        tile_rows = budget_rows
        t = budget_rows
        while t >= sub_mult:  # prefer a tile that divides rows exactly
            if rows % t == 0:
                tile_rows = t
                break
            t -= sub_mult

    grid = (pl.cdiv(rows, tile_rows),)
    in_spec = pl.BlockSpec((tile_rows, lane), lambda i: (i, 0))
    out_spec = pl.BlockSpec((tile_rows, lane), lambda i: (i, 0))

    x2d = x.reshape(rows, lane)  # glue: metadata-only flatten

    y2d = pl.pallas_call(
        _copy_kernel,
        out_shape=jax.ShapeDtypeStruct((rows, lane), x.dtype),
        grid=grid,
        in_specs=[in_spec],
        out_specs=out_spec,
        # Output aliases the input buffer: with a donated input the copy is
        # in-place and the HBM write-back traffic is not doubled.
        input_output_aliases={0: 0},
        compiler_params=pltpu.CompilerParams(
            dimension_semantics=("parallel",),  # shard row-blocks across TCs
        ),
        cost_estimate=pl.CostEstimate(
            flops=0,
            transcendentals=0,
            bytes_accessed=2 * total * itemsize,
        ),
    )(x2d)

    return y2d.reshape(out_shape)  # glue: metadata-only reshape


if __name__ == "__main__":
    key = jax.random.PRNGKey(0)

    # --- Example mirroring the module: NnReshape(1024) on a (2, 4, 16, 16) x.
    x = jax.random.normal(key, (2, 4, 16, 16), dtype=jnp.float32)
    y = nn_reshape_pallas(x, (1024,))
    jax.block_until_ready(y)
    assert y.shape == (2, 1024)
    assert jnp.allclose(y, x.reshape(2, 1024))

    # --- Inverse: NnReshape(4, 16, 16) on the flat tensor, and a -1 case.
    z = nn_reshape_pallas(y, (4, 16, 16))
    jax.block_until_ready(z)
    assert z.shape == (2, 4, 16, 16)
    assert jnp.allclose(z, x)

    w = nn_reshape_pallas(x, (4, -1))
    jax.block_until_ready(w)
    assert w.shape == (2, 4, 256)
    assert jnp.allclose(w, x.reshape(2, 4, 256))

    # --- Medium-size case: exercises the multi-block grid (2 MiB row tiles,
    #     2 parallel grid steps -> both v7x TensorCores).
    xm = jax.random.normal(key, (16, 512, 128), dtype=jnp.float32)
    ym = nn_reshape_pallas(xm, (-1,))
    jax.block_until_ready(ym)
    assert ym.shape == (16, 512 * 128)
    assert jnp.allclose(ym, xm.reshape(16, -1))

    # --- Non-128-multiple feature size: exercises the (B, flat) fallback
    #     (full-extent lane dim, no whole-array VMEM blowup).
    xo = jax.random.normal(key, (16, 9, 7), dtype=jnp.float32)
    yo = nn_reshape_pallas(xo, (63,))
    jax.block_until_ready(yo)
    assert yo.shape == (16, 63)
    assert jnp.allclose(yo, xo.reshape(16, 63))

    print("KERNEL_OK")
</pallas_src>

<mosaic_0001>
module attributes {stable_mosaic.version = 11 : i64} {
  func.func @_copy_kernel(%arg0: i32, %arg1: memref<2x1024xf32, #tpu.memory_space<vmem>>, %arg2: memref<2x1024xf32, #tpu.memory_space<vmem>>) attributes {dimension_semantics = [#tpu.dimension_semantics<parallel>], iteration_bounds = array<i64: 1>, scalar_prefetch = 0 : i64, scratch_operands = 0 : i64, tpu.core_type = #tpu.core_type<tc>, window_params = [{transform_indices = @transform_0, window_bounds = array<i64: 2, 1024>}, {transform_indices = @transform_1, window_bounds = array<i64: 2, 1024>}]} {
    %c0 = arith.constant 0 : index
    %c0_0 = arith.constant 0 : index
    %0 = vector.load %arg1[%c0, %c0_0] : memref<2x1024xf32, #tpu.memory_space<vmem>>, vector<2x1024xf32>
    %c0_1 = arith.constant 0 : index
    %c0_2 = arith.constant 0 : index
    %1 = vector.load %arg2[%c0_1, %c0_2] : memref<2x1024xf32, #tpu.memory_space<vmem>>, vector<2x1024xf32>
    tpu.vector_store %arg2[%c0_1, %c0_2], %0 {strides = array<i32>} : memref<2x1024xf32, #tpu.memory_space<vmem>>, vector<2x1024xf32>,
    return
  }
  func.func @transform_0(%arg0: i32) -> (i32, i32) {
    %c0_i32 = arith.constant 0 : i32
    %c0_i32_0 = arith.constant 0 : i32
    return %arg0, %c0_i32 : i32, i32
  }
  func.func @transform_1(%arg0: i32) -> (i32, i32) {
    %c0_i32 = arith.constant 0 : i32
    %c0_i32_0 = arith.constant 0 : i32
    return %arg0, %c0_i32 : i32, i32
  }
}

</mosaic_0001>

<bundles_post_ra>
// kernel: tpu_custom_call.1
= control target key start
LH: loop header
LB: loop body
LE: loop exit
PB: predicated region body
PF: predicated region fallthrough
CT: control target
= control target key end

     0   :  { %6 = vsyncpa [#allocation3], 0  ;;  %s126_s0 = inlined_call_operand.hbm [shape: f32[2,1024], index: 0, kind: input, shape index: {}, may-alias: {0,1}]   ;;  %s127_s1 = inlined_call_operand.hbm [shape: f32[2,1024], index: 1, kind: output, shape index: {}, may-alias: {0,1}]  }
   0x1   :  { %7 = vsyncpa [#allocation4], 0  ;;  %s90_s6 = smov [#allocation2]   ;;  %s42_s10 = scalar_lea.hbm %s126_s0, 256 }
   0x2   :  { %s14_s7 = sshll.u32 %s90_s6, 4  ;;  %p43_p0 = scmp.ne.s32.totalorder %s126_s0, %s42_s10  ;;  %s15_s7 = int_to_ptr.vmem [resolvable:$true] %s14_s7 }
   0x3   :  { %p46_p1 = scmp.lt.u32.totalorder %s42_s10, %s126_s0 }
   0x5   :  { %p48_p2 = pnand %p46_p1, %p43_p0 }
   0x7   :  { %51 = shalt.err (!%p48_p2)
}
   0x8   :  { %s52_s15 = scalar_lea.vmem %s15_s7, 256  ;;  %p57_p4 = scmp.lt.s32.totalorder %s15_s7, %s15_s7 }
   0x9   :  { %p53_p3 = scmp.ne.s32.totalorder %s15_s7, %s52_s15  ;;  %p58_p5 = scmp.lt.s32.totalorder %s52_s15, %s52_s15 }
   0xb   :  { %p59_p6 = por %p58_p5, %p57_p4 }
   0xd   :  { %p60_p7 = pnand %p59_p6, %p53_p3 }
   0xf   :  { %63 = shalt.err (!%p60_p7)
}
  0x10   :  { %17 = dma.hbm_to_vmem [thread:$0]  %s126_s0, 256, %s15_s7, [#allocation3]  }
  0x11   :  { %86 = dma.done.wait [#allocation3], 256  }
  0x12   :  { %87 = vsyncadd [#allocation3], 4294967040  ;;  %s91_s18 = smov [#allocation5]   ;;  %v21_v0 = vld [vmem:[#allocation2] sm:$0xff]  ;;  %v22_v1 = vld [vmem:[#allocation2 + $0x8] sm:$0xff] }
  0x13   :  { %s31_s19 = sshll.u32 %s91_s18, 4  ;;  %23 = vst [vmem:[#allocation5] sm:$0xff] %v21_v0  ;;  %24 = vst [vmem:[#allocation5 + $0x8] sm:$0xff] %v22_v1  ;;  %s32_s19 = int_to_ptr.vmem [resolvable:$true] %s31_s19 }
  0x14   :  { %s64_s20 = scalar_lea.vmem %s32_s19, 256  ;;  %p69_p9 = scmp.lt.s32.totalorder %s32_s19, %s32_s19 }
  0x15   :  { %p65_p8 = scmp.ne.s32.totalorder %s32_s19, %s64_s20  ;;  %p70_p10 = scmp.lt.s32.totalorder %s64_s20, %s64_s20 }
  0x17   :  { %p71_p11 = por %p70_p10, %p69_p9 }
  0x19   :  { %p72_p12 = pnand %p71_p11, %p65_p8 }
  0x1b   :  { %75 = shalt.err (!%p72_p12)
}
  0x1c   :  { %s76_s0 = scalar_lea.hbm %s127_s1, 256 }
  0x1d   :  { %p77_p13 = scmp.ne.s32.totalorder %s127_s1, %s76_s0  ;;  %p80_p0 = scmp.lt.u32.totalorder %s76_s0, %s127_s1 }
  0x1f   :  { %p82_p1 = pnand %p80_p0, %p77_p13 }
  0x21   :  { %85 = shalt.err (!%p82_p1)
}
  0x22   :  { %34 = dma.vmem_to_hbm [thread:$0]  %s32_s19, 256, %s127_s1, [#allocation4]  }
  0x23   :  { %88 = dma.done.wait [#allocation4], 256  }
  0x24   :  { %89 = vsyncadd [#allocation4], 4294967040 }
  0x25   :  { %38 = vsyncpa [#allocation3], 1 }
  0x26   :  { %39 = vsyncpa [#allocation4], 1 }

</bundles_post_ra>
